<compile_context>
chip_gen: v7x
topology: tpu7x:2x2x1
jax: 0.10.0
libtpu: 0.0.40
codegen_flags: <defaults>
</compile_context>

<pallas_src>
import jax
import jax.numpy as jnp
import numpy as np
from jax import lax
from jax.experimental import pallas as pl
from jax.experimental.pallas import tpu as pltpu

LANES = 128
CHUNK = 32          # rows per inner-loop iteration: 4 f32 vregs per stream
_PAD_LOGIT = -1e4   # exp(-|x|) == 0 exactly -> BCE element and sigmoid are exactly 0


def _cdiv(a, b):
    return (a + b - 1) // b


def _round_up(a, b):
    return _cdiv(a, b) * b


def _pick_unroll(n):
    for u in (4, 2):
        if n >= u and n % u == 0:
            return u
    return 1


def _make_kernel(*, rows, block_rows, steps, total_blocks, num_splits):
    """Builds the kernel with all shape/tiling facts baked in as Python constants."""
    n_chunks = block_rows // CHUNK
    has_partial = (rows % block_rows) != 0
    has_empty = steps * num_splits > total_blocks
    partial_rows = rows - (total_blocks - 1) * block_rows      # valid rows in last block
    partial_chunks = _cdiv(partial_rows, CHUNK) if has_partial else n_chunks

    def chunk_stats(x, t):
        """Four (8,128) partial sums for one (CHUNK,128) chunk.

        One exp + one log per element (EUP); reciprocal is EUP-approx + one
        Newton step on the VPU; everything else is plain VALU work.
        """
        e = jnp.exp(-jnp.abs(x))
        bce = jnp.maximum(x, 0.0) - x * t + jnp.log1p(e)
        d = 1.0 + e
        r = pl.reciprocal(d, approx=True)
        r = r * (2.0 - d * r)                    # Newton refinement -> ~1e-7 rel err
        p = jnp.where(x >= 0.0, r, e * r)        # sigmoid(x), numerically stable

        def fold(v):                              # (CHUNK,128) -> (8,128): vreg-wise adds
            return v.reshape(CHUNK // 8, 8, LANES).sum(axis=0)

        return fold(bce), fold(p * t), fold(p), fold(t)

    def kernel(pred_ref, tgt_ref, acc_ref):
        # acc_ref block: (4, 8, 128) f32, resident across the inner ("arbitrary") axis.
        #   acc[0]=sum BCE, acc[1]=sum p*t, acc[2]=sum p, acc[3]=sum t
        c = pl.program_id(0)
        i = pl.program_id(1)
        blk = c * steps + i

        @pl.when(i == 0)
        def _():
            acc_ref[...] = jnp.zeros_like(acc_ref)

        def accumulate(masked, trip):
            def body(k, carry):
                a_bce, a_pt, a_p, a_t = carry
                r0 = pl.multiple_of(k * CHUNK, CHUNK)
                x = pred_ref[pl.ds(r0, CHUNK), :].astype(jnp.float32)
                t = tgt_ref[pl.ds(r0, CHUNK), :].astype(jnp.float32)
                if masked:
                    # Rows >= partial_rows are out-of-bounds (unspecified DMA fill);
                    # select safe values that contribute exactly zero to every sum.
                    rid = r0 + lax.broadcasted_iota(jnp.int32, (CHUNK, LANES), 0)
                    m = rid < partial_rows
                    x = jnp.where(m, x, _PAD_LOGIT)
                    t = jnp.where(m, t, 0.0)
                s_bce, s_pt, s_p, s_t = chunk_stats(x, t)
                return (a_bce + s_bce, a_pt + s_pt, a_p + s_p, a_t + s_t)

            z = jnp.zeros((8, LANES), jnp.float32)
            a_bce, a_pt, a_p, a_t = lax.fori_loop(
                0, trip, body, (z, z, z, z), unroll=_pick_unroll(trip))
            # Single stacked accumulator read-modify-write per grid step.
            acc_ref[...] += jnp.stack([a_bce, a_pt, a_p, a_t], axis=0)

        if has_partial or has_empty:
            full_limit = total_blocks - 1 if has_partial else total_blocks

            @pl.when(blk < full_limit)
            def _():
                accumulate(False, n_chunks)

            if has_partial:
                @pl.when(blk == total_blocks - 1)
                def _():
                    accumulate(True, partial_chunks)
            # blk >= total_blocks: empty step, contributes nothing.
        else:
            accumulate(False, n_chunks)

    return kernel


def combined_loss(pred, target, *, weight=0.5, smooth=1e-6,
                  block_rows=4096, num_splits=2):
    """weight * BCEWithLogitsLoss(pred, target) + (1 - weight) * dice_loss(pred, target)."""
    n = int(np.prod(pred.shape))
    flat_p = pred.reshape(-1)
    flat_t = target.reshape(-1)

    rows = n // LANES
    tail = n - rows * LANES

    # Sub-128-element tail (only when n is not lane-aligned): plain JAX, negligible.
    if tail:
        tp = flat_p[rows * LANES:].astype(jnp.float32)
        tt = flat_t[rows * LANES:].astype(jnp.float32)
        te = jnp.exp(-jnp.abs(tp))
        tbce = jnp.maximum(tp, 0.0) - tp * tt + jnp.log1p(te)
        tpp = jax.nn.sigmoid(tp)
        tail_sums = jnp.stack([tbce.sum(), (tpp * tt).sum(), tpp.sum(), tt.sum()])
    else:
        tail_sums = jnp.zeros((4,), jnp.float32)

    if rows == 0:
        sums = tail_sums
    else:
        # Lane-dense (rows, 128) view. For lane-aligned n this is a free reshape
        # (no copy, no pad). For unaligned n the prefix slice is one copy.
        # TODO(synk): a fully copy-free unaligned path would need a 1-D manual-DMA variant.
        if tail:
            p2 = flat_p[: rows * LANES].reshape(rows, LANES)
            t2 = flat_t[: rows * LANES].reshape(rows, LANES)
        else:
            p2 = flat_p.reshape(rows, LANES)
            t2 = flat_t.reshape(rows, LANES)

        # Shrink the row-tile for small inputs so each split gets work; keep it a
        # multiple of CHUNK. No rounding of the block count up to num_splits:
        # uneven / empty trailing steps are skipped inside the kernel.
        br = min(block_rows, _round_up(_cdiv(rows, num_splits), CHUNK))
        br = max(CHUNK, _round_up(br, CHUNK))
        total_blocks = _cdiv(rows, br)
        steps = _cdiv(total_blocks, num_splits)

        if steps * num_splits > total_blocks:
            idx_map = lambda c, i: (jnp.minimum(c * steps + i, total_blocks - 1), 0)
        else:
            idx_map = lambda c, i: (c * steps + i, 0)

        kernel = _make_kernel(rows=rows, block_rows=br, steps=steps,
                              total_blocks=total_blocks, num_splits=num_splits)

        partial = pl.pallas_call(
            kernel,
            out_shape=jax.ShapeDtypeStruct((num_splits, 4, 8, LANES), jnp.float32),
            grid_spec=pltpu.PrefetchScalarGridSpec(
                num_scalar_prefetch=0,
                grid=(num_splits, steps),
                in_specs=[
                    pl.BlockSpec((br, LANES), idx_map),
                    pl.BlockSpec((br, LANES), idx_map),
                ],
                out_specs=pl.BlockSpec((None, 4, 8, LANES), lambda c, i: (c, 0, 0, 0)),
            ),
            compiler_params=pltpu.CompilerParams(
                dimension_semantics=("parallel", "arbitrary")),
        )(p2, t2)

        # Tiny epilogue: one cross-lane reduce of num_splits*4*8*128 floats.
        sums = jnp.sum(partial, axis=(0, 2, 3)) + tail_sums

    bce_mean = sums[0] / n
    dice = (2.0 * sums[1] + smooth) / (sums[2] + sums[3] + smooth)
    return weight * bce_mean + (1.0 - weight) * (1.0 - dice)


def _reference_combined_loss(pred, target, weight=0.5, smooth=1e-6):
    x = pred.astype(jnp.float32).reshape(-1)
    t = target.astype(jnp.float32).reshape(-1)
    bce = jnp.mean(jnp.maximum(x, 0.0) - x * t + jnp.log1p(jnp.exp(-jnp.abs(x))))
    p = jax.nn.sigmoid(x)
    inter = jnp.sum(p * t)
    dice = (2.0 * inter + smooth) / (jnp.sum(p) + jnp.sum(t) + smooth)
    return weight * bce + (1.0 - weight) * (1.0 - dice)


if __name__ == "__main__":
    key = jax.random.PRNGKey(0)
    k_pred, k_tgt = jax.random.split(key)

    # pred: raw logits, target: binary mask — NCHW like the PyTorch module.
    pred = jax.random.normal(k_pred, (2, 4, 16, 16), dtype=jnp.float32)
    target = (jax.random.uniform(k_tgt, (2, 4, 16, 16)) > 0.5).astype(jnp.float32)

    loss = combined_loss(pred, target, weight=0.5)
    loss = jax.block_until_ready(loss)

    ref = jax.block_until_ready(_reference_combined_loss(pred, target, weight=0.5))
    assert np.allclose(np.asarray(loss), np.asarray(ref), rtol=1e-5, atol=1e-5), (
        float(loss), float(ref))

    print("KERNEL_OK")
</pallas_src>

<mosaic_0001>
module attributes {stable_mosaic.version = 11 : i64} {
  func.func @kernel(%arg0: i32, %arg1: i32, %arg2: memref<32x128xf32, #tpu.memory_space<vmem>>, %arg3: memref<32x128xf32, #tpu.memory_space<vmem>>, %arg4: memref<1x4x8x128xf32, #tpu.memory_space<vmem>>) attributes {dimension_semantics = [#tpu.dimension_semantics<parallel>, #tpu.dimension_semantics<arbitrary>], iteration_bounds = array<i64: 2, 1>, scalar_prefetch = 0 : i64, scratch_operands = 0 : i64, tpu.core_type = #tpu.core_type<tc>, window_params = [{transform_indices = @transform_0, window_bounds = array<i64: 32, 128>}, {transform_indices = @transform_1, window_bounds = array<i64: 32, 128>}, {transform_indices = @transform_2, window_bounds = array<i64: 1, 4, 8, 128>}]} {
    %c1_i32 = arith.constant 1 : i32
    %0 = arith.muli %arg0, %c1_i32 : i32
    %1 = arith.addi %0, %arg1 : i32
    %c0_i32 = arith.constant 0 : i32
    %2 = arith.cmpi eq, %arg1, %c0_i32 : i32
    %3 = arith.extui %2 : i1 to i32
    %c0_i32_0 = arith.constant 0 : i32
    %4 = arith.cmpi ne, %3, %c0_i32_0 : i32
    scf.if %4 {
      %cst = arith.constant 0.000000e+00 : f32
      %11 = vector.broadcast %cst : f32 to vector<4x8x128xf32>
      %c0 = arith.constant 0 : index
      %c0_5 = arith.constant 0 : index
      %c0_6 = arith.constant 0 : index
      %c0_7 = arith.constant 0 : index
      %12 = vector.load %arg4[%c0, %c0_5, %c0_6, %c0_7] : memref<1x4x8x128xf32, #tpu.memory_space<vmem>>, vector<1x4x8x128xf32>
      %13 = vector.shape_cast %12 : vector<1x4x8x128xf32> to vector<4x8x128xf32>
      %14 = vector.shape_cast %11 : vector<4x8x128xf32> to vector<1x4x8x128xf32>
      tpu.vector_store %arg4[%c0, %c0_5, %c0_6, %c0_7], %14 {strides = array<i32>} : memref<1x4x8x128xf32, #tpu.memory_space<vmem>>, vector<1x4x8x128xf32>,
    } else {
    }
    %c0_i32_1 = arith.constant 0 : i32
    %5 = arith.cmpi slt, %1, %c0_i32_1 : i32
    %6 = arith.extui %5 : i1 to i32
    %c0_i32_2 = arith.constant 0 : i32
    %7 = arith.cmpi ne, %6, %c0_i32_2 : i32
    scf.if %7 {
      %cst = arith.constant 0.000000e+00 : f32
      %11 = vector.broadcast %cst : f32 to vector<8x128xf32>
      %c0_i32_5 = arith.constant 0 : i32
      %c32_i32 = arith.constant 32 : i32
      %12 = arith.muli %c0_i32_5, %c32_i32 : i32
      %13 = tpu.assume_multiple %12, 32 : i32
      %14 = arith.index_cast %13 : i32 to index
      %c0 = arith.constant 0 : index
      %15 = vector.load %arg2[%14, %c0] : memref<32x128xf32, #tpu.memory_space<vmem>>, vector<32x128xf32>
      %16 = arith.index_cast %13 : i32 to index
      %c0_6 = arith.constant 0 : index
      %17 = vector.load %arg3[%16, %c0_6] : memref<32x128xf32, #tpu.memory_space<vmem>>, vector<32x128xf32>
      %18 = math.absf %15 : vector<32x128xf32>
      %cst_7 = arith.constant 0.000000e+00 : f32
      %19 = vector.broadcast %cst_7 : f32 to vector<32x128xf32>
      %20 = arith.subf %19, %18 : vector<32x128xf32>
      %21 = math.exp %20 : vector<32x128xf32>
      %cst_8 = arith.constant 0.000000e+00 : f32
      %22 = vector.broadcast %cst_8 : f32 to vector<32x128xf32>
      %23 = arith.maximumf %15, %22 : vector<32x128xf32>
      %24 = arith.mulf %15, %17 : vector<32x128xf32>
      %25 = arith.subf %23, %24 : vector<32x128xf32>
      %26 = math.log1p %21 : vector<32x128xf32>
      %27 = arith.addf %25, %26 : vector<32x128xf32>
      %cst_9 = arith.constant 1.000000e+00 : f32
      %28 = vector.broadcast %cst_9 : f32 to vector<32x128xf32>
      %29 = arith.addf %28, %21 : vector<32x128xf32>
      %30 = tpu.reciprocal %29 {approx = true} : vector<32x128xf32> -> vector<32x128xf32>
      %31 = arith.mulf %29, %30 : vector<32x128xf32>
      %cst_10 = arith.constant 2.000000e+00 : f32
      %32 = vector.broadcast %cst_10 : f32 to vector<32x128xf32>
      %33 = arith.subf %32, %31 : vector<32x128xf32>
      %34 = arith.mulf %30, %33 : vector<32x128xf32>
      %cst_11 = arith.constant 0.000000e+00 : f32
      %35 = vector.broadcast %cst_11 : f32 to vector<32x128xf32>
      %36 = arith.cmpf oge, %15, %35 : vector<32x128xf32>
      %37 = arith.mulf %21, %34 : vector<32x128xf32>
      %38 = arith.select %36, %34, %37 : vector<32x128xi1>, vector<32x128xf32>
      %39 = vector.shape_cast %27 : vector<32x128xf32> to vector<4x8x128xf32>
      %cst_12 = arith.constant dense<0.000000e+00> : vector<8x128xf32>
      %40 = vector.multi_reduction <add>, %39, %cst_12 [0] : vector<4x8x128xf32> to vector<8x128xf32>
      %41 = arith.mulf %38, %17 : vector<32x128xf32>
      %42 = vector.shape_cast %41 : vector<32x128xf32> to vector<4x8x128xf32>
      %cst_13 = arith.constant dense<0.000000e+00> : vector<8x128xf32>
      %43 = vector.multi_reduction <add>, %42, %cst_13 [0] : vector<4x8x128xf32> to vector<8x128xf32>
      %44 = vector.shape_cast %38 : vector<32x128xf32> to vector<4x8x128xf32>
      %cst_14 = arith.constant dense<0.000000e+00> : vector<8x128xf32>
      %45 = vector.multi_reduction <add>, %44, %cst_14 [0] : vector<4x8x128xf32> to vector<8x128xf32>
      %46 = vector.shape_cast %17 : vector<32x128xf32> to vector<4x8x128xf32>
      %cst_15 = arith.constant dense<0.000000e+00> : vector<8x128xf32>
      %47 = vector.multi_reduction <add>, %46, %cst_15 [0] : vector<4x8x128xf32> to vector<8x128xf32>
      %48 = arith.addf %11, %40 : vector<8x128xf32>
      %49 = arith.addf %11, %43 : vector<8x128xf32>
      %50 = arith.addf %11, %45 : vector<8x128xf32>
      %51 = arith.addf %11, %47 : vector<8x128xf32>
      %c1_i32_16 = arith.constant 1 : i32
      %c0_17 = arith.constant 0 : index
      %c0_18 = arith.constant 0 : index
      %c0_19 = arith.constant 0 : index
      %c0_20 = arith.constant 0 : index
      %52 = vector.load %arg4[%c0_17, %c0_18, %c0_19, %c0_20] : memref<1x4x8x128xf32, #tpu.memory_space<vmem>>, vector<1x4x8x128xf32>
      %53 = vector.shape_cast %52 : vector<1x4x8x128xf32> to vector<4x8x128xf32>
      %54 = vector.shape_cast %48 : vector<8x128xf32> to vector<1x8x128xf32>
      %55 = vector.shape_cast %49 : vector<8x128xf32> to vector<1x8x128xf32>
      %56 = vector.shape_cast %50 : vector<8x128xf32> to vector<1x8x128xf32>
      %57 = vector.shape_cast %51 : vector<8x128xf32> to vector<1x8x128xf32>
      %58 = tpu.concatenate %54, %55, %56, %57 in 0 : vector<1x8x128xf32>, vector<1x8x128xf32>, vector<1x8x128xf32>, vector<1x8x128xf32> -> vector<4x8x128xf32>
      %59 = arith.addf %53, %58 : vector<4x8x128xf32>
      %c0_21 = arith.constant 0 : index
      %c0_22 = arith.constant 0 : index
      %c0_23 = arith.constant 0 : index
      %c0_24 = arith.constant 0 : index
      %60 = vector.load %arg4[%c0_21, %c0_22, %c0_23, %c0_24] : memref<1x4x8x128xf32, #tpu.memory_space<vmem>>, vector<1x4x8x128xf32>
      %61 = vector.shape_cast %60 : vector<1x4x8x128xf32> to vector<4x8x128xf32>
      %62 = vector.shape_cast %59 : vector<4x8x128xf32> to vector<1x4x8x128xf32>
      tpu.vector_store %arg4[%c0_21, %c0_22, %c0_23, %c0_24], %62 {strides = array<i32>} : memref<1x4x8x128xf32, #tpu.memory_space<vmem>>, vector<1x4x8x128xf32>,
    } else {
    }
    %c0_i32_3 = arith.constant 0 : i32
    %8 = arith.cmpi eq, %1, %c0_i32_3 : i32
    %9 = arith.extui %8 : i1 to i32
    %c0_i32_4 = arith.constant 0 : i32
    %10 = arith.cmpi ne, %9, %c0_i32_4 : i32
    scf.if %10 {
      %cst = arith.constant 0.000000e+00 : f32
      %11 = vector.broadcast %cst : f32 to vector<8x128xf32>
      %c0_i32_5 = arith.constant 0 : i32
      %c32_i32 = arith.constant 32 : i32
      %12 = arith.muli %c0_i32_5, %c32_i32 : i32
      %13 = tpu.assume_multiple %12, 32 : i32
      %14 = arith.index_cast %13 : i32 to index
      %c0 = arith.constant 0 : index
      %15 = vector.load %arg2[%14, %c0] : memref<32x128xf32, #tpu.memory_space<vmem>>, vector<32x128xf32>
      %16 = arith.index_cast %13 : i32 to index
      %c0_6 = arith.constant 0 : index
      %17 = vector.load %arg3[%16, %c0_6] : memref<32x128xf32, #tpu.memory_space<vmem>>, vector<32x128xf32>
      %18 = tpu.iota {dimensions = array<i32: 0>} : vector<32x128xi32>
      %19 = vector.broadcast %13 : i32 to vector<32x128xi32>
      %20 = arith.addi %19, %18 : vector<32x128xi32>
      %c16_i32 = arith.constant 16 : i32
      %21 = vector.broadcast %c16_i32 : i32 to vector<32x128xi32>
      %22 = arith.cmpi slt, %20, %21 : vector<32x128xi32>
      %cst_7 = arith.constant -1.000000e+04 : f32
      %23 = vector.broadcast %cst_7 : f32 to vector<32x128xf32>
      %24 = arith.select %22, %15, %23 : vector<32x128xi1>, vector<32x128xf32>
      %cst_8 = arith.constant 0.000000e+00 : f32
      %25 = vector.broadcast %cst_8 : f32 to vector<32x128xf32>
      %26 = arith.select %22, %17, %25 : vector<32x128xi1>, vector<32x128xf32>
      %27 = math.absf %24 : vector<32x128xf32>
      %cst_9 = arith.constant 0.000000e+00 : f32
      %28 = vector.broadcast %cst_9 : f32 to vector<32x128xf32>
      %29 = arith.subf %28, %27 : vector<32x128xf32>
      %30 = math.exp %29 : vector<32x128xf32>
      %cst_10 = arith.constant 0.000000e+00 : f32
      %31 = vector.broadcast %cst_10 : f32 to vector<32x128xf32>
      %32 = arith.maximumf %24, %31 : vector<32x128xf32>
      %33 = arith.mulf %24, %26 : vector<32x128xf32>
      %34 = arith.subf %32, %33 : vector<32x128xf32>
      %35 = math.log1p %30 : vector<32x128xf32>
      %36 = arith.addf %34, %35 : vector<32x128xf32>
      %cst_11 = arith.constant 1.000000e+00 : f32
      %37 = vector.broadcast %cst_11 : f32 to vector<32x128xf32>
      %38 = arith.addf %37, %30 : vector<32x128xf32>
      %39 = tpu.reciprocal %38 {approx = true} : vector<32x128xf32> -> vector<32x128xf32>
      %40 = arith.mulf %38, %39 : vector<32x128xf32>
      %cst_12 = arith.constant 2.000000e+00 : f32
      %41 = vector.broadcast %cst_12 : f32 to vector<32x128xf32>
      %42 = arith.subf %41, %40 : vector<32x128xf32>
      %43 = arith.mulf %39, %42 : vector<32x128xf32>
      %cst_13 = arith.constant 0.000000e+00 : f32
      %44 = vector.broadcast %cst_13 : f32 to vector<32x128xf32>
      %45 = arith.cmpf oge, %24, %44 : vector<32x128xf32>
      %46 = arith.mulf %30, %43 : vector<32x128xf32>
      %47 = arith.select %45, %43, %46 : vector<32x128xi1>, vector<32x128xf32>
      %48 = vector.shape_cast %36 : vector<32x128xf32> to vector<4x8x128xf32>
      %cst_14 = arith.constant dense<0.000000e+00> : vector<8x128xf32>
      %49 = vector.multi_reduction <add>, %48, %cst_14 [0] : vector<4x8x128xf32> to vector<8x128xf32>
      %50 = arith.mulf %47, %26 : vector<32x128xf32>
      %51 = vector.shape_cast %50 : vector<32x128xf32> to vector<4x8x128xf32>
      %cst_15 = arith.constant dense<0.000000e+00> : vector<8x128xf32>
      %52 = vector.multi_reduction <add>, %51, %cst_15 [0] : vector<4x8x128xf32> to vector<8x128xf32>
      %53 = vector.shape_cast %47 : vector<32x128xf32> to vector<4x8x128xf32>
      %cst_16 = arith.constant dense<0.000000e+00> : vector<8x128xf32>
      %54 = vector.multi_reduction <add>, %53, %cst_16 [0] : vector<4x8x128xf32> to vector<8x128xf32>
      %55 = vector.shape_cast %26 : vector<32x128xf32> to vector<4x8x128xf32>
      %cst_17 = arith.constant dense<0.000000e+00> : vector<8x128xf32>
      %56 = vector.multi_reduction <add>, %55, %cst_17 [0] : vector<4x8x128xf32> to vector<8x128xf32>
      %57 = arith.addf %11, %49 : vector<8x128xf32>
      %58 = arith.addf %11, %52 : vector<8x128xf32>
      %59 = arith.addf %11, %54 : vector<8x128xf32>
      %60 = arith.addf %11, %56 : vector<8x128xf32>
      %c1_i32_18 = arith.constant 1 : i32
      %c0_19 = arith.constant 0 : index
      %c0_20 = arith.constant 0 : index
      %c0_21 = arith.constant 0 : index
      %c0_22 = arith.constant 0 : index
      %61 = vector.load %arg4[%c0_19, %c0_20, %c0_21, %c0_22] : memref<1x4x8x128xf32, #tpu.memory_space<vmem>>, vector<1x4x8x128xf32>
      %62 = vector.shape_cast %61 : vector<1x4x8x128xf32> to vector<4x8x128xf32>
      %63 = vector.shape_cast %57 : vector<8x128xf32> to vector<1x8x128xf32>
      %64 = vector.shape_cast %58 : vector<8x128xf32> to vector<1x8x128xf32>
      %65 = vector.shape_cast %59 : vector<8x128xf32> to vector<1x8x128xf32>
      %66 = vector.shape_cast %60 : vector<8x128xf32> to vector<1x8x128xf32>
      %67 = tpu.concatenate %63, %64, %65, %66 in 0 : vector<1x8x128xf32>, vector<1x8x128xf32>, vector<1x8x128xf32>, vector<1x8x128xf32> -> vector<4x8x128xf32>
      %68 = arith.addf %62, %67 : vector<4x8x128xf32>
      %c0_23 = arith.constant 0 : index
      %c0_24 = arith.constant 0 : index
      %c0_25 = arith.constant 0 : index
      %c0_26 = arith.constant 0 : index
      %69 = vector.load %arg4[%c0_23, %c0_24, %c0_25, %c0_26] : memref<1x4x8x128xf32, #tpu.memory_space<vmem>>, vector<1x4x8x128xf32>
      %70 = vector.shape_cast %69 : vector<1x4x8x128xf32> to vector<4x8x128xf32>
      %71 = vector.shape_cast %68 : vector<4x8x128xf32> to vector<1x4x8x128xf32>
      tpu.vector_store %arg4[%c0_23, %c0_24, %c0_25, %c0_26], %71 {strides = array<i32>} : memref<1x4x8x128xf32, #tpu.memory_space<vmem>>, vector<1x4x8x128xf32>,
    } else {
    }
    return
  }
  func.func @transform_0(%arg0: i32, %arg1: i32) -> (i32, i32) {
    %c1_i32 = arith.constant 1 : i32
    %0 = arith.muli %arg0, %c1_i32 : i32
    %1 = arith.addi %0, %arg1 : i32
    %c0_i32 = arith.constant 0 : i32
    %2 = arith.minsi %1, %c0_i32 : i32
    %c0_i32_0 = arith.constant 0 : i32
    %c0_i32_1 = arith.constant 0 : i32
    return %2, %c0_i32_0 : i32, i32
  }
  func.func @transform_1(%arg0: i32, %arg1: i32) -> (i32, i32) {
    %c1_i32 = arith.constant 1 : i32
    %0 = arith.muli %arg0, %c1_i32 : i32
    %1 = arith.addi %0, %arg1 : i32
    %c0_i32 = arith.constant 0 : i32
    %2 = arith.minsi %1, %c0_i32 : i32
    %c0_i32_0 = arith.constant 0 : i32
    %c0_i32_1 = arith.constant 0 : i32
    return %2, %c0_i32_0 : i32, i32
  }
  func.func @transform_2(%arg0: i32, %arg1: i32) -> (i32, i32, i32, i32) {
    %c0_i32 = arith.constant 0 : i32
    %c0_i32_0 = arith.constant 0 : i32
    %c0_i32_1 = arith.constant 0 : i32
    %c0_i32_2 = arith.constant 0 : i32
    return %arg0, %c0_i32, %c0_i32_0, %c0_i32_1 : i32, i32, i32, i32
  }
}

</mosaic_0001>

<bundles_post_ra>
// kernel: tpu_custom_call.1
= control target key start
LH: loop header
LB: loop body
LE: loop exit
PB: predicated region body
PF: predicated region fallthrough
CT: control target
= control target key end

     0   :  { %7 = vsyncpa [#allocation3], 0  ;;  %s1375_s0 = inlined_call_operand.hbm [shape: f32[16,128], index: 0, kind: input, shape index: {}]   ;;  %s1376_s1 = inlined_call_operand.hbm [shape: f32[16,128], index: 1, kind: input, shape index: {}]   ;;  %s1377_s2 = inlined_call_operand.hbm [shape: f32[2,4,8,128], index: 2, kind: output, shape index: {}]  }
   0x1   :  { %9 = vsyncpa [#allocation3 + $0x1], 0 }
   0x2   :  { %10 = vsyncpa [#allocation6], 0 }
   0x3   :  { %12 = vsyncpa [#allocation6 + $0x1], 0 }
   0x4   :  { %13 = vsyncpa [#allocation4], 0 }
   0x5   :  { %15 = vsyncpa [#allocation4 + $0x1], 0  ;;  %s1039_s9 = smov 0   ;;  %s1041_s10 = smov 0  }
   0x6   :  { %s1043_s11 = smov 0   ;;  %s1045_s12 = smov 0  }
   0x7   :  { %s1047_s13 = smov 0   ;;  %s1049_s14 = smov 0  }
   0x8   :  { %s1051_s15 = smov 0   ;;  %s1053_s16 = smov 0  }
   0x9 LB: > { %s689_s17 = sadd.s32 4294967295, %s1012_s16   ;;  %s690_s18 = sadd.s32 4294967294, %s1012_s16   ;;  %s1012_s16 = sphi %s1053_s16, %s21_s16   ;;  %s1008_s15 = sphi %s1051_s15, %s1393_s15   ;;  %s1004_s14 = sphi %s1049_s14, %s1392_s14   ;;  %s1000_s13 = sphi %s1047_s13, %s1365_s13   ;;  %s996_s12 = sphi %s1045_s12, %s1391_s12   ;;  %s992_s11 = sphi %s1043_s11, %s1390_s11   ;;  %s988_s10 = sphi %s1041_s10, %s1389_s10   ;;  %s984_s9 = sphi %s1039_s9, %s1388_s9  }
   0xa   : > { %s33_s19 = sadd.s32 1, %s1008_s15  ;;  %p981_p1 = scmp.ne.s32.totalorder %s1000_s13, 0 }
   0xb   : > { %p35_p0 = scmp.ge.s32.totalorder %s33_s19, 2  ;;  %p54_p2 = scmp.eq.s32.totalorder %s1012_s16, 0 }
   0xc   : > { %p59_p3 = scmp.ne.s32.totalorder %s1000_s13, %s996_s12  ;;  %p60_p5 = scmp.eq.s32.totalorder %s689_s17, 0 }
   0xd   : > { %s1395_s19 = smov (%p35_p0, %s33_s19), 0  ;;  %p1085_p4 = por %p981_p1, %p54_p2 }
   0xe   : > { %p1089_p6 = por %p60_p5, %p59_p3  ;;  %s101_s22 = ssub.s32 %s1008_s15, %s1395_s19 }
   0xf   : > { %p102_p7 = scmp.eq.s32.totalorder %s101_s22, 0  ;;  %s104_s23 = sadd.s32 1, %s992_s11 }
  0x10   : > { %p114_p8 = scmp.ne.s32.totalorder %s992_s11, %s988_s10  ;;  %p115_p9 = scmp.eq.s32.totalorder %s689_s17, 1 }
  0x11   : > { %s1097_s24 = scalar_select %p102_p7, %s992_s11, %s104_s23  }
  0x12   : > { %p120_p10 = scmp.ne.s32.totalorder %s988_s10, %s984_s9  ;;  %p121_p11 = scmp.eq.s32.totalorder %s690_s18, 1 }
  0x13   : > { %p1103_p12 = por %p115_p9, %p114_p8  ;;  %p1378_p0 = scmp.ge.s32.totalorder %s1012_s16, 2 }
  0x14   : > { %p1107_p13 = por %p121_p11, %p120_p10 }
  0x15   : > { %137 = sbr.rel (%p1378_p0) target bundleno = 82 (0x52), region = 16 }
  0x1c   : > { %140 = sbr.rel (!%p1085_p4) target bundleno = 55 (0x37), region = 20 }
  0x23   : > { %154 = vsyncadd [#allocation3], 256  ;;  %s1014_s27 = smov [#allocation2]   ;;  %s845_s3 = scalar_lea.hbm %s1375_s0, 256 }
  0x24   : > { %s159_s28 = sshll.u32 %s1014_s27, 4  ;;  %p846_p1 = scmp.ne.s32.totalorder %s1375_s0, %s845_s3  ;;  %s160_s28 = int_to_ptr.vmem [resolvable:$true] %s159_s28 }
  0x25   : > { %p851_p2 = scmp.lt.u32.totalorder %s845_s3, %s845_s3  ;;  %p853_p3 = scmp.lt.u32.totalorder %s845_s3, %s1375_s0 }
  0x27   : > { %p854_p5 = por %p853_p3, %p851_p2 }
  0x29   : > { %p855_p7 = pnand %p854_p5, %p846_p1 }
  0x2b   : > { %858 = shalt.err (!%p855_p7)
}
  0x2c   : > { %s859_s8 = scalar_lea.vmem %s160_s28, 256  ;;  %s865_s12 = scalar_lea.vmem %s160_s28, 1024 }
  0x2d   : > { %p860_p8 = scmp.ne.s32.totalorder %s160_s28, %s859_s8  ;;  %p866_p9 = scmp.lt.s32.totalorder %s160_s28, %s160_s28 }
  0x2e   : > { %p867_p10 = scmp.lt.s32.totalorder %s865_s12, %s859_s8 }
  0x30   : > { %p868_p11 = por %p867_p10, %p866_p9 }
  0x32   : > { %p869_p0 = pnand %p868_p11, %p860_p8 }
  0x34   : > { %872 = shalt.err (!%p869_p0)
}
  0x35   : > { %s1015_s17 = smov 128   ;;  %s1016_s18 = smov 8  }
  0x36   : > { %165 = dma.hbm_to_vmem [thread:$0]  %s1375_s0, 256, %s160_s28, [#allocation3], %s1015_s17, %s1015_s17, %s1016_s18  }
  0x37 PF: > { %168 = sbr.rel (!%p1085_p4) target bundleno = 82 (0x52), region = 24 }
  0x3e   : > { %182 = vsyncadd [#allocation6], 256  ;;  %s1017_s27 = smov [#allocation5]   ;;  %s873_s4 = scalar_lea.hbm %s1376_s1, 256 }
  0x3f   : > { %s187_s29 = sshll.u32 %s1017_s27, 4  ;;  %p874_p0 = scmp.ne.s32.totalorder %s1376_s1, %s873_s4  ;;  %s188_s29 = int_to_ptr.vmem [resolvable:$true] %s187_s29 }
  0x40   : > { %p879_p1 = scmp.lt.u32.totalorder %s873_s4, %s873_s4  ;;  %p881_p2 = scmp.lt.u32.totalorder %s873_s4, %s1376_s1 }
  0x42   : > { %p882_p3 = por %p881_p2, %p879_p1 }
  0x44   : > { %p883_p5 = pnand %p882_p3, %p874_p0 }
  0x46   : > { %886 = shalt.err (!%p883_p5)
}
  0x47   : > { %s887_s20 = scalar_lea.vmem %s188_s29, 256  ;;  %s893_s28 = scalar_lea.vmem %s188_s29, 1024 }
  0x48   : > { %p888_p4 = scmp.ne.s32.totalorder %s188_s29, %s887_s20  ;;  %p894_p7 = scmp.lt.s32.totalorder %s188_s29, %s188_s29 }
  0x49   : > { %p895_p8 = scmp.lt.s32.totalorder %s893_s28, %s887_s20 }
  0x4b   : > { %p896_p9 = por %p895_p8, %p894_p7 }
  0x4d   : > { %p897_p10 = pnand %p896_p9, %p888_p4 }
  0x4f   : > { %900 = shalt.err (!%p897_p10)
}
  0x50   : > { %s1018_s12 = smov 128   ;;  %s1019_s17 = smov 8  }
  0x51   : > { %193 = dma.hbm_to_vmem [thread:$0]  %s1376_s1, 256, %s188_s29, [#allocation6], %s1018_s12, %s1018_s12, %s1019_s17  }
  0x52 PF: > { %p707_p11 = scmp.ge.s32.totalorder %s1012_s16, 1  ;;  %p195_p0 = scmp.lt.s32.totalorder %s1012_s16, 3 }
  0x54   : > { %p196_p1 = pnand %p707_p11, %p195_p0 }
  0x55   : > { %s201_s23 = sand.u32 (!%p196_p1), 1, %s1000_s13  }
  0x56   : > { %199 = sbr.rel (%p196_p1) target bundleno = 229 (0xe5), region = 28  ;;  %s708_s27 = sshll.u32 (!%p196_p1), %s201_s23, 5 }
  0x57   : > { %s202_s30 = scalar_lea.sflag (!%p196_p1), [#allocation3], %s201_s23  ;;  %s1145_s3 = scalar_lea.vmem (!%p196_p1), [#allocation2], %s708_s27 }
  0x5d   : > { %966 = dma.done.wait (%p1089_p6), %s202_s30, 512  }
  0x5e   : > { %968 = vsyncadd (%p1089_p6), %s202_s30, 4294966784  ;;  %s211_s29 = scalar_lea.sflag [#allocation6], %s201_s23  ;;  %s1151_s4 = scalar_lea.vmem [#allocation5], %s708_s27 }
  0x5f   : > { %970 = dma.done.wait (%p1089_p6), %s211_s29, 512  }
  0x60   : > { %972 = vsyncadd (%p1089_p6), %s211_s29, 4294966784  ;;  %s237_s5 = sand.u32 1, %s988_s10   ;;  %v1020_v0 = vmov 0.0   ;;  %p711_p2 = scmp.ge.s32.totalorder %s1004_s14, 0 }
  0x61   : > { %s710_s6 = sshll.u32 %s237_s5, 5  ;;  %v1168_v1 = vld [vmem:[%s1145_s3] sm:$0xff] (!%p711_p2)  ;;  %v1171_v2 = vld [vmem:[%s1145_s3 + $0x8] sm:$0xff] (!%p711_p2)  ;;  %v1174_v3 = vld [vmem:[%s1145_s3 + $0x10] sm:$0xff] (!%p711_p2) }
  0x62   : > { %s1160_s7 = scalar_lea.vmem [#allocation7], %s710_s6  ;;  %264 = sbr.rel (%p711_p2) target bundleno = 153 (0x99), region = 44  ;;  %v1177_v4 = vld [vmem:[%s1145_s3 + $0x18] sm:$0xff] (!%p711_p2)  ;;  %v273_v5 = vand.u32 (!%p711_p2), 2147483647, %v1168_v1  ;;  %v1184_v17 = vld [vmem:[%s1151_s4] sm:$0xff] (!%p711_p2) }
  0x63   : > { %257 = vst [vmem:[%s1160_s7] sm:$0xff] %v1020_v0  ;;  %258 = vst [vmem:[%s1160_s7 + $0x8] sm:$0xff] %v1020_v0  ;;  %v274_v6 = vand.u32 (!%p711_p2), 2147483647, %v1171_v2  ;;  %v275_v7 = vand.u32 (!%p711_p2), 2147483647, %v1174_v3  ;;  %v1187_v18 = vld [vmem:[%s1151_s4 + $0x8] sm:$0xff] (!%p711_p2)  ;;  %v293_v38 = vmul.f32 (!%p711_p2), %v1184_v17, %v1168_v1 }
  0x64   : > { %259 = vst [vmem:[%s1160_s7 + $0x10] sm:$0xff] %v1020_v0  ;;  %260 = vst [vmem:[%s1160_s7 + $0x18] sm:$0xff] %v1020_v0  ;;  %v276_v8 = vand.u32 (!%p711_p2), 2147483647, %v1177_v4  ;;  %v277_v9 = vsub.f32 (!%p711_p2), 0.0, %v273_v5  ;;  %v386_v19 = vadd.f32 (!%p711_p2), %v1187_v18, %v1184_v17  ;;  %v1192_v20 = vld [vmem:[%s1151_s4 + $0x10] sm:$0xff] (!%p711_p2)  ;;  %v294_v41 = vmul.f32 (!%p711_p2), %v1187_v18, %v1171_v2 }
  0x65   : > { %v278_v10 = vsub.f32 (!%p711_p2), 0.0, %v274_v6  ;;  %v279_v11 = vsub.f32 (!%p711_p2), 0.0, %v275_v7  ;;  %v1196_v22 = vld [vmem:[%s1151_s4 + $0x18] sm:$0xff] (!%p711_p2)  ;;  %v289_v37 = vmax.f32 (!%p711_p2), %v1168_v1, 0.0  ;;  %v290_v44 = vmax.f32 (!%p711_p2), %v1171_v2, 0.0 }
  0x66   : > { %v280_v12 = vsub.f32 (!%p711_p2), 0.0, %v276_v8  ;;  %v281_v13 = vmul.f32 (!%p711_p2), 1.442695, %v277_v9  ;;  %v387_v21 = vadd.f32 (!%p711_p2), %v386_v19, %v1192_v20  ;;  %v291_v47 = vmax.f32 (!%p711_p2), %v1174_v3, 0.0 }
  0x67   : > { %v283_v14 = vmul.f32 (!%p711_p2), 1.442695, %v278_v10  ;;  %v285_v15 = vmul.f32 (!%p711_p2), 1.442695, %v279_v11  ;;  %v295_v48 = vmul.f32 (!%p711_p2), %v1192_v20, %v1174_v3  ;;  %v292_v50 = vmax.f32 (!%p711_p2), %v1177_v4, 0.0 }
  0x68   : > { %809 = vpow2.f32 (!%p711_p2), %v281_v13  ;;  %v287_v16 = vmul.f32 (!%p711_p2), 1.442695, %v280_v12  ;;  %v388_v24 = vadd.f32 (!%p711_p2), %v387_v21, %v1196_v22  ;;  %v296_v51 = vmul.f32 (!%p711_p2), %v1196_v22, %v1177_v4 }
  0x69   : > { %811 = vpow2.f32 %v283_v14  ;;  %v297_v55 = vsub.f32 %v289_v37, %v293_v38  ;;  %v298_v60 = vsub.f32 %v290_v44, %v294_v41  ;;  %v299_v5 = vsub.f32 %v291_v47, %v295_v48 }
  0x6a   : > { %813 = vpow2.f32 %v285_v15  ;;  %v300_v11 = vsub.f32 %v292_v50, %v296_v51  ;;  %v393_v44 = vld [vmem:[%s1160_s7] sm:$0xff]  ;;  %vm361_vm4 = vcmp.ge.f32.partialorder %v1168_v1, 0.0  ;;  %vm362_vm5 = vcmp.ge.f32.partialorder %v1171_v2, 0.0 }
  0x6b   : > { %815 = vpow2.f32 %v287_v16  ;;  %v396_v23 = vld [vmem:[%s1160_s7 + $0x18] sm:$0xff]  ;;  %vm363_vm6 = vcmp.ge.f32.partialorder %v1174_v3, 0.0  ;;  %vm364_vm7 = vcmp.ge.f32.partialorder %v1177_v4, 0.0 }
  0x6c   : > { %v400_v25 = vadd.f32 %v396_v23, %v388_v24 }
  0x6e   : > { %404 = vst [vmem:[%s1160_s7 + $0x18] sm:$0xff] %v400_v25 }
  0x72   : > { %v1200_v26 = vpop.eup %809 }
  0x73   : > { %v1203_v27 = vpop.eup %811  ;;  %v301_v28 = vadd.f32 1.0, %v1200_v26  ;;  %v304_v33 = vmul.f32 -0.5, %v1200_v26  ;;  %v307_v42 = vand.u32 2147483647, %v1200_v26 }
  0x74   : > { %v1206_v29 = vpop.eup %813  ;;  %v1209_v30 = vadd.f32 1.0, %v1203_v27  ;;  %v313_v34 = vmul.f32 -0.5, %v1203_v27  ;;  %v316_v45 = vand.u32 2147483647, %v1203_v27 }
  0x75   : > { %v1211_v31 = vpop.eup %815  ;;  %817 = vlog2.f32 %v301_v28  ;;  %v1214_v32 = vadd.f32 1.0, %v1206_v29  ;;  %v322_v36 = vmul.f32 -0.5, %v1206_v29  ;;  %v305_v39 = vadd.f32 1.0, %v304_v33 }
  0x76   : > { %819 = vlog2.f32 %v1209_v30  ;;  %v328_v35 = vadd.f32 1.0, %v1211_v31  ;;  %v331_v40 = vmul.f32 -0.5, %v1211_v31  ;;  %v314_v43 = vadd.f32 1.0, %v313_v34 }
  0x77   : > { %821 = vlog2.f32 %v1214_v32  ;;  %v323_v46 = vadd.f32 1.0, %v322_v36  ;;  %v325_v49 = vand.u32 2147483647, %v1206_v29  ;;  %v306_v52 = vmul.f32 %v1200_v26, %v305_v39 }
  0x78   : > { %823 = vlog2.f32 %v328_v35  ;;  %v332_v53 = vadd.f32 1.0, %v331_v40  ;;  %vm1241_vm0 = vcmp.lt.f32.partialorder %v307_v42, 0.0004427343  ;;  %v315_v57 = vmul.f32 %v1203_v27, %v314_v43 }
  0x79   : > { %825 = vrcp.f32 %v301_v28  ;;  %v334_v58 = vand.u32 2147483647, %v1211_v31  ;;  %vm1247_vm1 = vcmp.lt.f32.partialorder %v316_v45, 0.0004427343  ;;  %v324_v63 = vmul.f32 %v1206_v29, %v323_v46 }
  0x7a   : > { %827 = vrcp.f32 %v1209_v30  ;;  %vm326_vm2 = vcmp.lt.f32.partialorder %v325_v49, 0.0004427343  ;;  %v333_v9 = vmul.f32 %v1211_v31, %v332_v53 }
  0x7b   : > { %829 = vrcp.f32 %v1214_v32  ;;  %vm335_vm3 = vcmp.lt.f32.partialorder %v334_v58, 0.0004427343 }
  0x7c   : > { %831 = vrcp.f32 %v328_v35 }
  0x7f   : > { %v818_v54 = vpop.eup %817 }
  0x80   : > { %v820_v59 = vpop.eup %819  ;;  %v303_v61 = vmul.f32 0.6931472, %v818_v54 }
  0x81   : > { %v822_v0 = vpop.eup %821  ;;  %v312_v6 = vmul.f32 0.6931472, %v820_v59 }
  0x82   : > { %v309_v7 = vsel %vm1241_vm0, %v306_v52, %v303_v61  ;;  %v321_v8 = vmul.f32 0.6931472, %v822_v0  ;;  %v824_v10 = vpop.eup %823 }
  0x83   : > { %v318_v12 = vsel %vm1247_vm1, %v315_v57, %v312_v6  ;;  %v337_v13 = vadd.f32 %v309_v7, %v297_v55  ;;  %v826_v14 = vpop.eup %825  ;;  %v330_v16 = vmul.f32 0.6931472, %v824_v10  ;;  %v395_v57 = vld [vmem:[%s1160_s7 + $0x10] sm:$0xff] }
  0x84   : > { %v327_v15 = vsel %vm326_vm2, %v324_v63, %v321_v8  ;;  %v338_v19 = vadd.f32 %v318_v12, %v298_v60  ;;  %v828_v21 = vpop.eup %827  ;;  %v349_v24 = vmul.f32 %v826_v14, %v301_v28 }
  0x85   : > { %v339_v23 = vadd.f32 %v327_v15, %v299_v5  ;;  %v830_v25 = vpop.eup %829  ;;  %v336_v33 = vsel %vm335_vm3, %v333_v9, %v330_v16  ;;  %v350_v36 = vmul.f32 %v828_v21, %v1209_v30 }
  0x86   : > { %v373_v34 = vadd.f32 %v338_v19, %v337_v13  ;;  %v832_v37 = vpop.eup %831  ;;  %v340_v38 = vadd.f32 %v336_v33, %v300_v11  ;;  %v351_v39 = vmul.f32 %v830_v25, %v1214_v32  ;;  %v353_v40 = vsub.f32 2.0, %v349_v24 }
  0x87   : > { %v352_v42 = vmul.f32 %v832_v37, %v328_v35  ;;  %v354_v43 = vsub.f32 2.0, %v350_v36 }
  0x88   : > { %v374_v41 = vadd.f32 %v373_v34, %v339_v23  ;;  %v355_v45 = vsub.f32 2.0, %v351_v39  ;;  %v357_v46 = vmul.f32 %v826_v14, %v353_v40 }
  0x89   : > { %v356_v48 = vsub.f32 2.0, %v352_v42  ;;  %v358_v28 = vmul.f32 %v828_v21, %v354_v43 }
  0x8a   : > { %v375_v47 = vadd.f32 %v374_v41, %v340_v38  ;;  %v359_v49 = vmul.f32 %v830_v25, %v355_v45  ;;  %v365_v30 = vmul.f32 %v1200_v26, %v357_v46 }
  0x8b   : > { %v360_v32 = vmul.f32 %v832_v37, %v356_v48  ;;  %v366_v35 = vmul.f32 %v1203_v27, %v358_v28 }
  0x8c   : > { %v397_v50 = vadd.f32 %v393_v44, %v375_v47  ;;  %v367_v51 = vmul.f32 %v1206_v29, %v359_v49  ;;  %v369_v52 = vsel %vm361_vm4, %v357_v46, %v365_v30 }
  0x8d   : > { %v368_v1 = vmul.f32 %v1211_v31, %v360_v32  ;;  %v370_v53 = vsel %vm362_vm5, %v358_v28, %v366_v35  ;;  %v376_v2 = vmul.f32 %v369_v52, %v1184_v17  ;;  %v394_v31 = vld [vmem:[%s1160_s7 + $0x8] sm:$0xff] }
  0x8e   : > { %401 = vst [vmem:[%s1160_s7] sm:$0xff] %v397_v50  ;;  %v371_v26 = vsel %vm363_vm6, %v359_v49, %v367_v51  ;;  %v377_v3 = vmul.f32 %v370_v53, %v1187_v18  ;;  %v383_v54 = vadd.f32 %v370_v53, %v369_v52 }
  0x8f   : > { %v372_v27 = vsel %vm364_vm7, %v360_v32, %v368_v1  ;;  %v378_v55 = vmul.f32 %v371_v26, %v1192_v20 }
  0x90   : > { %v379_v4 = vmul.f32 %v372_v27, %v1196_v22  ;;  %v380_v29 = vadd.f32 %v377_v3, %v376_v2  ;;  %v384_v56 = vadd.f32 %v383_v54, %v371_v26 }
  0x92   : > { %v381_v58 = vadd.f32 %v380_v29, %v378_v55  ;;  %v385_v59 = vadd.f32 %v384_v56, %v372_v27 }
  0x94   : > { %v382_v60 = vadd.f32 %v381_v58, %v379_v4  ;;  %v399_v61 = vadd.f32 %v395_v57, %v385_v59 }
  0x96   : > { %v398_v17 = vadd.f32 %v394_v31, %v382_v60  ;;  %403 = vst [vmem:[%s1160_s7 + $0x10] sm:$0xff] %v399_v61 }
  0x98   : > { %402 = vst [vmem:[%s1160_s7 + $0x8] sm:$0xff] %v398_v17 }
  0x99 PF: > { %p712_p6 = scmp.ne.s32.totalorder %s1004_s14, 0 }
  0x9a   : > { %v1279_v18 = vld [vmem:[%s1145_s3] sm:$0xff] (!%p712_p6)  ;;  %v1282_v20 = vld [vmem:[%s1145_s3 + $0x8] sm:$0xff] (!%p712_p6) }
  0x9b   : > { %408 = sbr.rel (%p712_p6) target bundleno = 204 (0xcc), region = 48  ;;  %v439_v22 = vand.u32 (!%p712_p6), 2147483647, %v1279_v18  ;;  %v440_v62 = vand.u32 (!%p712_p6), 2147483647, %v1282_v20  ;;  %v1287_v63 = vld [vmem:[%s1151_s4] sm:$0xff] (!%p712_p6) }
  0x9c   : > { %v1290_v0 = vld [vmem:[%s1151_s4 + $0x8] sm:$0xff] (!%p712_p6)  ;;  %v562_v8 = vld [vmem:[%s1160_s7 + $0x18] sm:$0xff] (!%p712_p6)  ;;  %v455_v23 = vmax.f32 (!%p712_p6), %v1279_v18, 0.0  ;;  %v459_v24 = vmul.f32 (!%p712_p6), %v1287_v63, %v1279_v18  ;;  %v456_v34 = vmax.f32 (!%p712_p6), %v1282_v20, 0.0  ;;  %v559_v51 = vld [vmem:[%s1160_s7] sm:$0xff] (!%p712_p6)  ;;  %vm527_vm10 = vcmp.ge.f32.partialorder (!%p712_p6), %v1279_v18, 0.0 }
  0x9d   : > { %v443_v5 = vsub.f32 (!%p712_p6), 0.0, %v439_v22  ;;  %v444_v6 = vsub.f32 (!%p712_p6), 0.0, %v440_v62  ;;  %v552_v7 = vadd.f32 (!%p712_p6), %v1290_v0, %v1287_v63  ;;  %v460_v36 = vmul.f32 (!%p712_p6), %v1290_v0, %v1282_v20  ;;  %v561_v29 = vld [vmem:[%s1160_s7 + $0x10] sm:$0xff] (!%p712_p6) }
  0x9e   : > { %v463_v40 = vsub.f32 (!%p712_p6), %v455_v23, %v459_v24  ;;  %vm528_vm11 = vcmp.ge.f32.partialorder (!%p712_p6), %v1282_v20, 0.0 }
  0x9f   : > { %v447_v9 = vmul.f32 (!%p712_p6), 1.442695, %v443_v5  ;;  %v449_v10 = vmul.f32 (!%p712_p6), 1.442695, %v444_v6  ;;  %v566_v11 = vadd.f32 (!%p712_p6), %v562_v8, %v552_v7  ;;  %v464_v43 = vsub.f32 (!%p712_p6), %v456_v34, %v460_v36  ;;  %v560_v58 = vld [vmem:[%s1160_s7 + $0x8] sm:$0xff] (!%p712_p6) }
  0xa1   : > { %833 = vpow2.f32 (!%p712_p6), %v447_v9  ;;  %570 = vst [vmem:[%s1160_s7 + $0x18] sm:$0xff] (!%p712_p6), %v566_v11 }
  0xa2   : > { %835 = vpow2.f32 %v449_v10 }
  0xab   : > { %v834_v12 = vpop.eup %833 }
  0xac   : > { %v836_v13 = vpop.eup %835  ;;  %v467_v14 = vadd.f32 1.0, %v834_v12  ;;  %v470_v16 = vmul.f32 -0.5, %v834_v12  ;;  %v473_v25 = vand.u32 2147483647, %v834_v12 }
  0xad   : > { %v476_v15 = vadd.f32 1.0, %v836_v13  ;;  %v479_v19 = vmul.f32 -0.5, %v836_v13  ;;  %v482_v37 = vand.u32 2147483647, %v836_v13 }
  0xae   : > { %837 = vlog2.f32 %v467_v14  ;;  %v471_v21 = vadd.f32 1.0, %v470_v16  ;;  %vm474_vm8 = vcmp.lt.f32.partialorder %v473_v25, 0.0004427343 }
  0xaf   : > { %839 = vlog2.f32 %v476_v15  ;;  %v480_v33 = vadd.f32 1.0, %v479_v19  ;;  %vm483_vm9 = vcmp.lt.f32.partialorder %v482_v37, 0.0004427343 }
  0xb0   : > { %841 = vrcp.f32 %v467_v14  ;;  %v472_v38 = vmul.f32 %v834_v12, %v471_v21 }
  0xb1   : > { %843 = vrcp.f32 %v476_v15  ;;  %v481_v41 = vmul.f32 %v836_v13, %v480_v33 }
  0xb8   : > { %v838_v39 = vpop.eup %837 }
  0xb9   : > { %v840_v42 = vpop.eup %839  ;;  %v469_v44 = vmul.f32 0.6931472, %v838_v39 }
  0xba   : > { %v842_v45 = vpop.eup %841  ;;  %v478_v46 = vmul.f32 0.6931472, %v840_v42 }
  0xbb   : > { %v844_v47 = vpop.eup %843  ;;  %v475_v48 = vsel %vm474_vm8, %v472_v38, %v469_v44  ;;  %v515_v28 = vmul.f32 %v842_v45, %v467_v14 }
  0xbc   : > { %v484_v49 = vsel %vm483_vm9, %v481_v41, %v478_v46  ;;  %v503_v30 = vadd.f32 %v475_v48, %v463_v40  ;;  %v516_v50 = vmul.f32 %v844_v47, %v476_v15 }
  0xbd   : > { %v504_v32 = vadd.f32 %v484_v49, %v464_v43  ;;  %v519_v35 = vsub.f32 2.0, %v515_v28 }
  0xbe   : > { %v520_v52 = vsub.f32 2.0, %v516_v50 }
  0xbf   : > { %v539_v1 = vadd.f32 %v504_v32, %v503_v30  ;;  %v523_v53 = vmul.f32 %v842_v45, %v519_v35 }
  0xc0   : > { %v524_v2 = vmul.f32 %v844_v47, %v520_v52 }
  0xc1   : > { %v563_v26 = vadd.f32 %v559_v51, %v539_v1  ;;  %v531_v3 = vmul.f32 %v834_v12, %v523_v53 }
  0xc2   : > { %v532_v54 = vmul.f32 %v836_v13, %v524_v2 }
  0xc3   : > { %567 = vst [vmem:[%s1160_s7] sm:$0xff] %v563_v26  ;;  %v535_v27 = vsel %vm527_vm10, %v523_v53, %v531_v3 }
  0xc4   : > { %v536_v55 = vsel %vm528_vm11, %v524_v2, %v532_v54  ;;  %v542_v4 = vmul.f32 %v535_v27, %v1287_v63 }
  0xc5   : > { %v543_v56 = vmul.f32 %v536_v55, %v1290_v0  ;;  %v549_v57 = vadd.f32 %v536_v55, %v535_v27 }
  0xc7   : > { %v546_v59 = vadd.f32 %v543_v56, %v542_v4  ;;  %v565_v31 = vadd.f32 %v561_v29, %v549_v57 }
  0xc9   : > { %v564_v60 = vadd.f32 %v560_v58, %v546_v59  ;;  %569 = vst [vmem:[%s1160_s7 + $0x10] sm:$0xff] %v565_v31 }
  0xcb   : > { %568 = vst [vmem:[%s1160_s7 + $0x8] sm:$0xff] %v564_v60 }
  0xcc PF: > { %s720_s21 = sshll.u32 %s1004_s14, 9  ;;  %s585_s12 = sshll.u32 %s1160_s7, 4  ;;  %s1319_s12 = int_to_ptr.vmem [resolvable:$true] %s585_s12 }
  0xcd   : > { %s1316_s28 = scalar_lea.hbm %s1377_s2, %s720_s21  ;;  %s1323_s17 = scalar_lea.sflag [#allocation4], %s237_s5 }
  0xce   : > { %s901_s18 = scalar_lea.vmem %s1319_s12, 512  ;;  %s1021_s14 = smov [#allocation7]  }
  0xcf   : > { %p902_p3 = scmp.ne.s32.totalorder %s1319_s12, %s901_s18  ;;  %s905_s22 = sshll.u32 %s1021_s14, 4  ;;  %s906_s22 = int_to_ptr.vmem [resolvable:$false] %s905_s22 }
  0xd0   : > { %s907_s23 = scalar_lea.vmem %s906_s22, 1024  ;;  %p908_p7 = scmp.lt.s32.totalorder %s1319_s12, %s906_s22 }
  0xd1   : > { %p903_p5 = pnand %p902_p3, %p1103_p12  ;;  %p909_p8 = scmp.lt.s32.totalorder %s907_s23, %s901_s18 }
  0xd3   : > { %p904_p4 = pneg %p903_p5  ;;  %p910_p9 = por %p909_p8, %p908_p7 }
  0xd5   : > { %p911_p10 = pnand %p910_p9, %p904_p4 }
  0xd7   : > { %914 = shalt.err (!%p911_p10)
}
  0xd8   : > { %s915_s27 = scalar_lea.hbm %s1316_s28, 512  ;;  %s919_s29 = scalar_lea.hbm %s1377_s2, 1024 }
  0xd9   : > { %p916_p11 = scmp.ne.s32.totalorder %s1316_s28, %s915_s27  ;;  %p920_p2 = scmp.lt.u32.totalorder %s1316_s28, %s1377_s2 }
  0xda   : > { %p921_p6 = scmp.lt.u32.totalorder %s919_s29, %s915_s27  ;;  %p923_p5 = scmp.lt.u32.totalorder %s915_s27, %s1316_s28 }
  0xdb   : > { %p917_p0 = pnand %p916_p11, %p1103_p12 }
  0xdc   : > { %p922_p3 = por %p921_p6, %p920_p2 }
  0xdd   : > { %p918_p1 = pneg %p917_p0 }
  0xde   : > { %p924_p4 = por %p923_p5, %p922_p3 }
  0xe0   : > { %p925_p7 = pnand %p924_p4, %p918_p1 }
  0xe2   : > { %928 = shalt.err (!%p925_p7)
}
  0xe3   : > { %s1022_s6 = smov 128   ;;  %s1023_s7 = smov 8  }
  0xe4   : > { %723 = dma.vmem_to_hbm [thread:$0]  (%p1103_p12), %s1319_s12, 512, %s1316_s28, %s1323_s17, %s1022_s6, %s1022_s6, %s1023_s7  }
  0xe5 PF: > { %s600_s21 = sand.u32 1, %s984_s9   ;;  %p1387_p8 = scmp.ge.s32.totalorder %s1012_s16, 2 }
  0xe6   : > { %s601_s8 = scalar_lea.sflag [#allocation4], %s600_s21 }
  0xe7   : > { %p726_p9 = pnand %p1387_p8, %p1107_p13 }
  0xe9   : > { %974 = dma.done.wait (!%p726_p9), %s601_s8, 512  }
  0xea   : > { %976 = vsyncadd (!%p726_p9), %s601_s8, 4294966784  ;;  %s21_s16 = sadd.s32 1, %s1012_s16   ;;  %s1388_s9 = smov %s988_s10 }
  0xeb   : > { %p18_p10 = scmp.ge.s32.totalorder %s21_s16, 4   ;;  %s1389_s10 = smov %s992_s11 }
  0xec   : > { %s1390_s11 = smov %s1097_s24  ;;  %s1391_s12 = smov %s1000_s13 }
  0xed   : > { %s1365_s13 = smov 0   ;;  %s1392_s14 = smov %s1008_s15 }
  0xee   : > { %s1393_s15 = smov %s1395_s19  ;;  %20 = sbr.rel (!%p18_p10) target bundleno = 9 (0x9), region = 98 }
  0xf5   :  { %606 = vsyncpa [#allocation3], 1 }
  0xf6   :  { %608 = vsyncpa [#allocation3 + $0x1], 1 }
  0xf7   :  { %609 = vsyncpa [#allocation6], 1 }
  0xf8   :  { %611 = vsyncpa [#allocation6 + $0x1], 1 }
  0xf9   :  { %612 = vsyncpa [#allocation4], 1 }
  0xfa   :  { %614 = vsyncpa [#allocation4 + $0x1], 1 }

</bundles_post_ra>
